<compile_context>
chip_gen: v7x
topology: tpu7x:2x2x1
jax: 0.10.0
libtpu: 0.0.40
codegen_flags: <defaults>
</compile_context>

<pallas_src>
import functools
import math

import jax
import jax.numpy as jnp
from jax import lax
from jax.experimental import pallas as pl
from jax.experimental.pallas import tpu as pltpu


def _round_up(a: int, b: int) -> int:
    return ((a + b - 1) // b) * b


def _encoder_kernel(x_ref, g2_ref, b2_ref, w1_ref, b1_ref, w2_ref, bb2_ref,
                    o_ref, xn_ref, acc_ref, *, true_dim):
    """grid = (token tiles [parallel], hidden chunks [arbitrary / reduction])."""
    j = pl.program_id(1)

    @pl.when(j == 0)
    def _init():
        x = x_ref[...].astype(jnp.float32)
        # One-pass LayerNorm stats (sum & sum-of-squares), eps = 1e-5, over true_dim
        # real features (padded lanes of x are zero so they don't perturb the sums).
        inv_d = 1.0 / true_dim
        s1 = jnp.sum(x, axis=-1, keepdims=True)
        s2 = jnp.sum(x * x, axis=-1, keepdims=True)
        mean = s1 * inv_d
        var = s2 * inv_d - mean * mean
        xn = (x - mean) * lax.rsqrt(var + 1e-5)
        xn = xn * g2_ref[...] + b2_ref[...]
        xn_ref[...] = xn.astype(jnp.bfloat16)        # cached for all hidden chunks
        acc_ref[...] = x + bb2_ref[...]              # residual + fc2 bias, seeded once

    # fc1 chunk -> exact (erf) GELU (matches nn.GELU default) -> fc2 partial, f32 accumulate.
    h = jnp.dot(xn_ref[...], w1_ref[...], preferred_element_type=jnp.float32)
    h = h + b1_ref[...]
    h = 0.5 * h * (1.0 + lax.erf(h * (1.0 / math.sqrt(2.0))))
    acc_ref[...] += jnp.dot(h.astype(jnp.bfloat16), w2_ref[...],
                            preferred_element_type=jnp.float32)

    @pl.when(j == pl.num_programs(1) - 1)
    def _finalize():
        o_ref[...] = acc_ref[...].astype(o_ref.dtype)


def transformer_encoder(x, params, *, tm=256, th=512,
                        vmem_limit_bytes=64 * 1024 * 1024):
    """x: [B, N, dim] float32.  params: LN / Linear parameters (see make_params)."""
    B, N, dim = x.shape
    hidden = params["w1"].shape[1]
    T = B * N

    # Lane-dense feature / hidden axes (multiples of 128); th divides the padded hidden.
    dim_p = _round_up(dim, 128)
    th = _round_up(min(th, _round_up(hidden, 128)), 128)
    hid_p = _round_up(hidden, th)

    # Token tile: default 256 rows; clamp/pad so the grid always divides evenly.
    tm_eff = min(tm, _round_up(T, 8))
    T_p = _round_up(T, tm_eff)

    # Zero-pad activations / params. Padded lanes stay exactly zero through LN (gamma/beta
    # padded with 0), both matmuls (zero weight rows/cols) and the residual, then sliced off.
    x2d = jnp.pad(x.reshape(T, dim), ((0, T_p - T), (0, dim_p - dim)))
    g2 = jnp.pad(params["ln2_gamma"], (0, dim_p - dim)).reshape(1, dim_p)
    b2 = jnp.pad(params["ln2_beta"], (0, dim_p - dim)).reshape(1, dim_p)
    w1 = jnp.pad(params["w1"], ((0, dim_p - dim), (0, hid_p - hidden))).astype(jnp.bfloat16)
    bb1 = jnp.pad(params["b1"], (0, hid_p - hidden)).reshape(1, hid_p)          # f32
    w2 = jnp.pad(params["w2"], ((0, hid_p - hidden), (0, dim_p - dim))).astype(jnp.bfloat16)
    bb2 = jnp.pad(params["b2"], (0, dim_p - dim)).reshape(1, dim_p)             # f32

    grid = (T_p // tm_eff, hid_p // th)

    cost = pl.CostEstimate(
        flops=4 * T_p * dim_p * hid_p,                       # two matmuls
        transcendentals=T_p * hid_p,                         # erf per hidden element
        bytes_accessed=(2 * T_p * dim_p * 4                  # x in + out (f32)
                        + 2 * dim_p * hid_p * 2              # bf16 weights
                        + (2 * dim_p + hid_p + dim_p) * 4),  # LN params + biases
    )

    kernel = functools.partial(_encoder_kernel, true_dim=dim)

    out = pl.pallas_call(
        kernel,
        out_shape=jax.ShapeDtypeStruct((T_p, dim_p), x.dtype),
        grid_spec=pltpu.PrefetchScalarGridSpec(
            num_scalar_prefetch=0,
            grid=grid,
            in_specs=[
                pl.BlockSpec((tm_eff, dim_p), lambda i, j: (i, 0)),   # x tile
                pl.BlockSpec((1, dim_p), lambda i, j: (0, 0)),        # ln2 gamma
                pl.BlockSpec((1, dim_p), lambda i, j: (0, 0)),        # ln2 beta
                pl.BlockSpec((dim_p, th), lambda i, j: (0, j)),       # fc1 weight chunk
                pl.BlockSpec((1, th), lambda i, j: (0, j)),           # fc1 bias chunk
                pl.BlockSpec((th, dim_p), lambda i, j: (j, 0)),       # fc2 weight chunk
                pl.BlockSpec((1, dim_p), lambda i, j: (0, 0)),        # fc2 bias
            ],
            out_specs=pl.BlockSpec((tm_eff, dim_p), lambda i, j: (i, 0)),
            scratch_shapes=[
                pltpu.VMEM((tm_eff, dim_p), jnp.bfloat16),   # cached norm2(x), bf16
                pltpu.VMEM((tm_eff, dim_p), jnp.float32),    # f32 accumulator (residual+MLP)
            ],
        ),
        compiler_params=pltpu.CompilerParams(
            dimension_semantics=("parallel", "arbitrary"),
            # Above the 16/32 MiB scoped defaults; <= physical VMEM on every generation
            # (can be raised to ~96 MiB on v5e/v6e for very large tiles).
            vmem_limit_bytes=vmem_limit_bytes,
        ),
        cost_estimate=cost,
    )(x2d, g2, b2, w1, bb1, w2, bb2)

    return out[:T, :dim].reshape(B, N, dim)


def make_params(key, dim, mlp_ratio):
    hidden = dim * mlp_ratio
    k1, k2, k3, k4 = jax.random.split(key, 4)
    # Deterministic synthetic init (PyTorch-like scales); LN init = ones/zeros.
    return {
        "ln2_gamma": jnp.ones((dim,), jnp.float32),
        "ln2_beta": jnp.zeros((dim,), jnp.float32),
        # stored already transposed relative to torch nn.Linear: (in, out)
        "w1": (jax.random.uniform(k1, (dim, hidden), jnp.float32, -1.0, 1.0)
               / math.sqrt(dim)),
        "b1": (jax.random.uniform(k2, (hidden,), jnp.float32, -1.0, 1.0)
               / math.sqrt(dim)),
        "w2": (jax.random.uniform(k3, (hidden, dim), jnp.float32, -1.0, 1.0)
               / math.sqrt(hidden)),
        "b2": (jax.random.uniform(k4, (dim,), jnp.float32, -1.0, 1.0)
               / math.sqrt(hidden)),
    }


def _layernorm_mlp_inputs(x, params):
    B, N, dim = x.shape
    x2 = x.reshape(B * N, dim)
    mean = jnp.mean(x2, axis=-1, keepdims=True)
    var = jnp.mean(jnp.square(x2 - mean), axis=-1, keepdims=True)
    xn = (x2 - mean) / jnp.sqrt(var + 1e-5)
    return x2, xn * params["ln2_gamma"] + params["ln2_beta"]


def reference_f32(x, params):
    """Pure-JAX f32 reference matching the PyTorch forward exactly."""
    B, N, dim = x.shape
    x2, xn = _layernorm_mlp_inputs(x, params)
    h = xn @ params["w1"] + params["b1"]
    h = 0.5 * h * (1.0 + lax.erf(h / math.sqrt(2.0)))
    y = h @ params["w2"] + params["b2"]
    return (x2 + y).reshape(B, N, dim)


def reference_bf16(x, params):
    """Reference emulating the kernel's bf16 matmul operands (f32 accumulation)."""
    B, N, dim = x.shape
    x2, xn = _layernorm_mlp_inputs(x, params)
    h = jnp.dot(xn.astype(jnp.bfloat16), params["w1"].astype(jnp.bfloat16),
                preferred_element_type=jnp.float32) + params["b1"]
    h = 0.5 * h * (1.0 + lax.erf(h / math.sqrt(2.0)))
    y = jnp.dot(h.astype(jnp.bfloat16), params["w2"].astype(jnp.bfloat16),
                preferred_element_type=jnp.float32) + params["b2"]
    return (x2 + y).reshape(B, N, dim)


if __name__ == "__main__":
    B, N, dim, mlp_ratio = 2, 8, 32, 4
    key = jax.random.PRNGKey(0)
    kx, kp = jax.random.split(key)
    x = jax.random.normal(kx, (B, N, dim), jnp.float32)
    params = make_params(kp, dim, mlp_ratio)

    out = jax.block_until_ready(transformer_encoder(x, params))

    assert out.shape == (B, N, dim)
    # Tight check against a reference with the same bf16 operand rounding.
    ref_b = reference_bf16(x, params)
    assert jnp.allclose(out, ref_b, atol=2e-3, rtol=2e-3), "mismatch vs bf16 reference"
    # Looser semantics check against the pure-f32 PyTorch-equivalent forward.
    ref_f = reference_f32(x, params)
    assert jnp.allclose(out, ref_f, atol=5e-2, rtol=5e-2), "mismatch vs f32 reference"

    print("KERNEL_OK")
</pallas_src>

<mosaic_0001>
module attributes {stable_mosaic.version = 11 : i64} {
  func.func @_encoder_kernel(%arg0: i32, %arg1: i32, %arg2: memref<16x128xf32, #tpu.memory_space<vmem>>, %arg3: memref<1x128xf32, #tpu.memory_space<vmem>>, %arg4: memref<1x128xf32, #tpu.memory_space<vmem>>, %arg5: memref<128x128xbf16, #tpu.memory_space<vmem>>, %arg6: memref<1x128xf32, #tpu.memory_space<vmem>>, %arg7: memref<128x128xbf16, #tpu.memory_space<vmem>>, %arg8: memref<1x128xf32, #tpu.memory_space<vmem>>, %arg9: memref<16x128xf32, #tpu.memory_space<vmem>>, %arg10: memref<16x128xbf16, #tpu.memory_space<vmem>>, %arg11: memref<16x128xf32, #tpu.memory_space<vmem>>) attributes {dimension_semantics = [#tpu.dimension_semantics<parallel>, #tpu.dimension_semantics<arbitrary>], iteration_bounds = array<i64: 1, 1>, scalar_prefetch = 0 : i64, scratch_operands = 2 : i64, tpu.core_type = #tpu.core_type<tc>, window_params = [{transform_indices = @transform_0, window_bounds = array<i64: 16, 128>}, {pipeline_mode = #tpu.pipeline_mode<synchronous>, transform_indices = @transform_1, window_bounds = array<i64: 1, 128>}, {pipeline_mode = #tpu.pipeline_mode<synchronous>, transform_indices = @transform_2, window_bounds = array<i64: 1, 128>}, {transform_indices = @transform_3, window_bounds = array<i64: 128, 128>}, {transform_indices = @transform_4, window_bounds = array<i64: 1, 128>}, {transform_indices = @transform_5, window_bounds = array<i64: 128, 128>}, {pipeline_mode = #tpu.pipeline_mode<synchronous>, transform_indices = @transform_6, window_bounds = array<i64: 1, 128>}, {transform_indices = @transform_7, window_bounds = array<i64: 16, 128>}]} {
    %c0_i32 = arith.constant 0 : i32
    %0 = arith.cmpi eq, %arg1, %c0_i32 : i32
    %1 = arith.extui %0 : i1 to i32
    %c0_i32_0 = arith.constant 0 : i32
    %2 = arith.cmpi ne, %1, %c0_i32_0 : i32
    scf.if %2 {
      %c0_18 = arith.constant 0 : index
      %c0_19 = arith.constant 0 : index
      %26 = vector.load %arg2[%c0_18, %c0_19] : memref<16x128xf32, #tpu.memory_space<vmem>>, vector<16x128xf32>
      %cst_20 = arith.constant dense<0.000000e+00> : vector<16xf32>
      %27 = vector.multi_reduction <add>, %26, %cst_20 [1] : vector<16x128xf32> to vector<16xf32>
      %28 = vector.shape_cast %27 : vector<16xf32> to vector<16x1xf32>
      %29 = arith.mulf %26, %26 : vector<16x128xf32>
      %cst_21 = arith.constant dense<0.000000e+00> : vector<16xf32>
      %30 = vector.multi_reduction <add>, %29, %cst_21 [1] : vector<16x128xf32> to vector<16xf32>
      %31 = vector.shape_cast %30 : vector<16xf32> to vector<16x1xf32>
      %cst_22 = arith.constant 3.125000e-02 : f32
      %32 = vector.broadcast %cst_22 : f32 to vector<16x1xf32>
      %33 = arith.mulf %28, %32 : vector<16x1xf32>
      %cst_23 = arith.constant 3.125000e-02 : f32
      %34 = vector.broadcast %cst_23 : f32 to vector<16x1xf32>
      %35 = arith.mulf %31, %34 : vector<16x1xf32>
      %36 = arith.mulf %33, %33 : vector<16x1xf32>
      %37 = arith.subf %35, %36 : vector<16x1xf32>
      %38 = vector.broadcast %33 : vector<16x1xf32> to vector<16x128xf32>
      %39 = arith.subf %26, %38 : vector<16x128xf32>
      %cst_24 = arith.constant 9.99999974E-6 : f32
      %40 = vector.broadcast %cst_24 : f32 to vector<16x1xf32>
      %41 = arith.addf %37, %40 : vector<16x1xf32>
      %42 = math.rsqrt %41 : vector<16x1xf32>
      %43 = vector.broadcast %42 : vector<16x1xf32> to vector<16x128xf32>
      %44 = arith.mulf %39, %43 : vector<16x128xf32>
      %c0_25 = arith.constant 0 : index
      %c0_26 = arith.constant 0 : index
      %45 = vector.load %arg3[%c0_25, %c0_26] : memref<1x128xf32, #tpu.memory_space<vmem>>, vector<1x128xf32>
      %46 = vector.broadcast %45 : vector<1x128xf32> to vector<16x128xf32>
      %47 = arith.mulf %44, %46 : vector<16x128xf32>
      %c0_27 = arith.constant 0 : index
      %c0_28 = arith.constant 0 : index
      %48 = vector.load %arg4[%c0_27, %c0_28] : memref<1x128xf32, #tpu.memory_space<vmem>>, vector<1x128xf32>
      %49 = vector.broadcast %48 : vector<1x128xf32> to vector<16x128xf32>
      %50 = arith.addf %47, %49 : vector<16x128xf32>
      %51 = arith.truncf %50 : vector<16x128xf32> to vector<16x128xbf16>
      %c0_29 = arith.constant 0 : index
      %c0_30 = arith.constant 0 : index
      %52 = vector.load %arg10[%c0_29, %c0_30] : memref<16x128xbf16, #tpu.memory_space<vmem>>, vector<16x128xbf16>
      tpu.vector_store %arg10[%c0_29, %c0_30], %51 {strides = array<i32>} : memref<16x128xbf16, #tpu.memory_space<vmem>>, vector<16x128xbf16>,
      %c0_31 = arith.constant 0 : index
      %c0_32 = arith.constant 0 : index
      %53 = vector.load %arg8[%c0_31, %c0_32] : memref<1x128xf32, #tpu.memory_space<vmem>>, vector<1x128xf32>
      %54 = vector.broadcast %53 : vector<1x128xf32> to vector<16x128xf32>
      %55 = arith.addf %26, %54 : vector<16x128xf32>
      %c0_33 = arith.constant 0 : index
      %c0_34 = arith.constant 0 : index
      %56 = vector.load %arg11[%c0_33, %c0_34] : memref<16x128xf32, #tpu.memory_space<vmem>>, vector<16x128xf32>
      tpu.vector_store %arg11[%c0_33, %c0_34], %55 {strides = array<i32>} : memref<16x128xf32, #tpu.memory_space<vmem>>, vector<16x128xf32>,
    } else {
    }
    %c0 = arith.constant 0 : index
    %c0_1 = arith.constant 0 : index
    %3 = vector.load %arg10[%c0, %c0_1] : memref<16x128xbf16, #tpu.memory_space<vmem>>, vector<16x128xbf16>
    %c0_2 = arith.constant 0 : index
    %c0_3 = arith.constant 0 : index
    %4 = vector.load %arg5[%c0_2, %c0_3] : memref<128x128xbf16, #tpu.memory_space<vmem>>, vector<128x128xbf16>
    %cst = arith.constant dense<0.000000e+00> : vector<16x128xf32>
    %5 = tpu.matmul %3, %4, %cst {dimension_numbers = #tpu.dot_dimension_numbers<[1], [0], [0], [1], [0, 0, 1, 1], [], []>} : vector<16x128xbf16>, vector<128x128xbf16>, vector<16x128xf32> -> vector<16x128xf32>
    %c0_4 = arith.constant 0 : index
    %c0_5 = arith.constant 0 : index
    %6 = vector.load %arg6[%c0_4, %c0_5] : memref<1x128xf32, #tpu.memory_space<vmem>>, vector<1x128xf32>
    %7 = vector.broadcast %6 : vector<1x128xf32> to vector<16x128xf32>
    %8 = arith.addf %5, %7 : vector<16x128xf32>
    %cst_6 = arith.constant 5.000000e-01 : f32
    %9 = vector.broadcast %cst_6 : f32 to vector<16x128xf32>
    %10 = arith.mulf %9, %8 : vector<16x128xf32>
    %cst_7 = arith.constant 0.707106769 : f32
    %11 = vector.broadcast %cst_7 : f32 to vector<16x128xf32>
    %12 = arith.mulf %8, %11 : vector<16x128xf32>
    %13 = math.erf %12 : vector<16x128xf32>
    %cst_8 = arith.constant 1.000000e+00 : f32
    %14 = vector.broadcast %cst_8 : f32 to vector<16x128xf32>
    %15 = arith.addf %14, %13 : vector<16x128xf32>
    %16 = arith.mulf %10, %15 : vector<16x128xf32>
    %c0_9 = arith.constant 0 : index
    %c0_10 = arith.constant 0 : index
    %17 = vector.load %arg11[%c0_9, %c0_10] : memref<16x128xf32, #tpu.memory_space<vmem>>, vector<16x128xf32>
    %18 = arith.truncf %16 : vector<16x128xf32> to vector<16x128xbf16>
    %c0_11 = arith.constant 0 : index
    %c0_12 = arith.constant 0 : index
    %19 = vector.load %arg7[%c0_11, %c0_12] : memref<128x128xbf16, #tpu.memory_space<vmem>>, vector<128x128xbf16>
    %cst_13 = arith.constant dense<0.000000e+00> : vector<16x128xf32>
    %20 = tpu.matmul %18, %19, %cst_13 {dimension_numbers = #tpu.dot_dimension_numbers<[1], [0], [0], [1], [0, 0, 1, 1], [], []>} : vector<16x128xbf16>, vector<128x128xbf16>, vector<16x128xf32> -> vector<16x128xf32>
    %21 = arith.addf %17, %20 : vector<16x128xf32>
    %c0_14 = arith.constant 0 : index
    %c0_15 = arith.constant 0 : index
    %22 = vector.load %arg11[%c0_14, %c0_15] : memref<16x128xf32, #tpu.memory_space<vmem>>, vector<16x128xf32>
    tpu.vector_store %arg11[%c0_14, %c0_15], %21 {strides = array<i32>} : memref<16x128xf32, #tpu.memory_space<vmem>>, vector<16x128xf32>,
    %c0_i32_16 = arith.constant 0 : i32
    %23 = arith.cmpi eq, %arg1, %c0_i32_16 : i32
    %24 = arith.extui %23 : i1 to i32
    %c0_i32_17 = arith.constant 0 : i32
    %25 = arith.cmpi ne, %24, %c0_i32_17 : i32
    scf.if %25 {
      %c0_18 = arith.constant 0 : index
      %c0_19 = arith.constant 0 : index
      %26 = vector.load %arg11[%c0_18, %c0_19] : memref<16x128xf32, #tpu.memory_space<vmem>>, vector<16x128xf32>
      %c0_20 = arith.constant 0 : index
      %c0_21 = arith.constant 0 : index
      %27 = vector.load %arg9[%c0_20, %c0_21] : memref<16x128xf32, #tpu.memory_space<vmem>>, vector<16x128xf32>
      tpu.vector_store %arg9[%c0_20, %c0_21], %26 {strides = array<i32>} : memref<16x128xf32, #tpu.memory_space<vmem>>, vector<16x128xf32>,
    } else {
    }
    return
  }
  func.func @transform_0(%arg0: i32, %arg1: i32) -> (i32, i32) {
    %c0_i32 = arith.constant 0 : i32
    %c0_i32_0 = arith.constant 0 : i32
    return %arg0, %c0_i32 : i32, i32
  }
  func.func @transform_1(%arg0: i32, %arg1: i32) -> (i32, i32) {
    %c0_i32 = arith.constant 0 : i32
    %c0_i32_0 = arith.constant 0 : i32
    %c0_i32_1 = arith.constant 0 : i32
    return %c0_i32, %c0_i32_0 : i32, i32
  }
  func.func @transform_2(%arg0: i32, %arg1: i32) -> (i32, i32) {
    %c0_i32 = arith.constant 0 : i32
    %c0_i32_0 = arith.constant 0 : i32
    %c0_i32_1 = arith.constant 0 : i32
    return %c0_i32, %c0_i32_0 : i32, i32
  }
  func.func @transform_3(%arg0: i32, %arg1: i32) -> (i32, i32) {
    %c0_i32 = arith.constant 0 : i32
    %c0_i32_0 = arith.constant 0 : i32
    return %c0_i32, %arg1 : i32, i32
  }
  func.func @transform_4(%arg0: i32, %arg1: i32) -> (i32, i32) {
    %c0_i32 = arith.constant 0 : i32
    %c0_i32_0 = arith.constant 0 : i32
    return %c0_i32, %arg1 : i32, i32
  }
  func.func @transform_5(%arg0: i32, %arg1: i32) -> (i32, i32) {
    %c0_i32 = arith.constant 0 : i32
    %c0_i32_0 = arith.constant 0 : i32
    return %arg1, %c0_i32 : i32, i32
  }
  func.func @transform_6(%arg0: i32, %arg1: i32) -> (i32, i32) {
    %c0_i32 = arith.constant 0 : i32
    %c0_i32_0 = arith.constant 0 : i32
    %c0_i32_1 = arith.constant 0 : i32
    return %c0_i32, %c0_i32_0 : i32, i32
  }
  func.func @transform_7(%arg0: i32, %arg1: i32) -> (i32, i32) {
    %c0_i32 = arith.constant 0 : i32
    %c0_i32_0 = arith.constant 0 : i32
    return %arg0, %c0_i32 : i32, i32
  }
}

</mosaic_0001>

<bundles_post_ra>
// kernel: tpu_custom_call.1
= control target key start
LH: loop header
LB: loop body
LE: loop exit
PB: predicated region body
PF: predicated region fallthrough
CT: control target
= control target key end

     0   :  { %12 = vsyncpa [#allocation5], 0  ;;  %s944_s0 = inlined_call_operand.hbm [shape: f32[16,128], index: 0, kind: input, shape index: {}]   ;;  %s945_s1 = inlined_call_operand.hbm [shape: f32[1,128], index: 1, kind: input, shape index: {}]   ;;  %s946_s2 = inlined_call_operand.hbm [shape: f32[1,128], index: 2, kind: input, shape index: {}]   ;;  %s947_s3 = inlined_call_operand.hbm [shape: bf16[128,128], index: 3, kind: input, shape index: {}]   ;;  %s948_s4 = inlined_call_operand.hbm [shape: f32[1,128], index: 4, kind: input, shape index: {}]   ;;  %s949_s5 = inlined_call_operand.hbm [shape: bf16[128,128], index: 5, kind: input, shape index: {}]   ;;  %s950_s6 = inlined_call_operand.hbm [shape: f32[1,128], index: 6, kind: input, shape index: {}]   ;;  %s951_s7 = inlined_call_operand.hbm [shape: f32[16,128], index: 7, kind: output, shape index: {}]  }
   0x1   :  { %13 = vsyncpa [#allocation8], 0 }
   0x2   :  { %14 = vsyncpa [#allocation11], 0 }
   0x3   :  { %15 = vsyncpa [#allocation14], 0 }
   0x4   :  { %16 = vsyncpa [#allocation6], 0  ;;  %s742_s24 = smov [#allocation7]   ;;  %s743_s26 = smov [#allocation10]  }
   0x5   :  { %s35_s25 = sshll.u32 %s742_s24, 4  ;;  %s54_s27 = sshll.u32 %s743_s26, 4  ;;  %s36_s25 = int_to_ptr.vmem [resolvable:$true] %s35_s25  ;;  %s796_s27 = int_to_ptr.vmem [resolvable:$true] %s54_s27 }
   0x6   :  { %s556_s30 = scalar_lea.hbm %s945_s1, 16 }
   0x7   :  { %p557_p0 = scmp.ne.s32.totalorder %s945_s1, %s556_s30  ;;  %p560_p1 = scmp.lt.u32.totalorder %s556_s30, %s945_s1 }
   0x9   :  { %p562_p2 = pnand %p560_p1, %p557_p0 }
   0xb   :  { %565 = shalt.err (!%p562_p2)
}
   0xc   :  { %s566_s12 = scalar_lea.vmem %s36_s25, 16  ;;  %s570_s13 = scalar_lea.vmem %s36_s25, 32 }
   0xd   :  { %p567_p3 = scmp.ne.s32.totalorder %s36_s25, %s566_s12  ;;  %p571_p4 = scmp.lt.s32.totalorder %s36_s25, %s36_s25 }
   0xe   :  { %p572_p5 = scmp.lt.s32.totalorder %s570_s13, %s566_s12 }
  0x10   :  { %p573_p6 = por %p572_p5, %p571_p4 }
  0x12   :  { %p574_p7 = pnand %p573_p6, %p567_p3 }
  0x14   :  { %577 = shalt.err (!%p574_p7)
}
  0x15   :  { %38 = dma.hbm_to_vmem [thread:$0]  %s945_s1, 16, %s36_s25, [#allocation8]  }
  0x16   :  { %s578_s18 = scalar_lea.hbm %s947_s3, 1024 }
  0x17   :  { %p579_p8 = scmp.ne.s32.totalorder %s947_s3, %s578_s18  ;;  %p582_p9 = scmp.lt.u32.totalorder %s578_s18, %s947_s3 }
  0x19   :  { %p584_p10 = pnand %p582_p9, %p579_p8 }
  0x1b   :  { %587 = shalt.err (!%p584_p10)
}
  0x1c   :  { %s588_s23 = scalar_lea.vmem %s796_s27, 1024  ;;  %p593_p12 = scmp.lt.s32.totalorder %s796_s27, %s796_s27 }
  0x1d   :  { %p589_p11 = scmp.ne.s32.totalorder %s796_s27, %s588_s23  ;;  %p594_p13 = scmp.lt.s32.totalorder %s588_s23, %s588_s23 }
  0x1f   :  { %p595_p0 = por %p594_p13, %p593_p12 }
  0x21   :  { %p596_p1 = pnand %p595_p0, %p589_p11 }
  0x23   :  { %599 = shalt.err (!%p596_p1)
}
  0x24   :  { %s744_s1 = smov 64   ;;  %s745_s24 = smov 4  }
  0x25   :  { %60 = dma.hbm_to_vmem [thread:$0]  %s947_s3, 1024, %s796_s27, [#allocation11], %s744_s1, %s744_s1, %s745_s24  }
  0x26   :  { %s746_s28 = smov [#allocation13]   ;;  %s747_s30 = smov [#allocation4]  }
  0x27   :  { %s76_s29 = sshll.u32 %s746_s28, 4  ;;  %s22_s8 = sshll.u32 %s747_s30, 4  ;;  %s77_s29 = int_to_ptr.vmem [resolvable:$true] %s76_s29  ;;  %s827_s8 = int_to_ptr.vmem [resolvable:$true] %s22_s8 }
  0x28   :  { %s600_s11 = scalar_lea.hbm %s949_s5, 1024 }
  0x29   :  { %p601_p2 = scmp.ne.s32.totalorder %s949_s5, %s600_s11  ;;  %p604_p3 = scmp.lt.u32.totalorder %s600_s11, %s949_s5 }
  0x2b   :  { %p606_p4 = pnand %p604_p3, %p601_p2 }
  0x2d   :  { %609 = shalt.err (!%p606_p4)
}
  0x2e   :  { %s610_s3 = scalar_lea.vmem %s77_s29, 1024  ;;  %p615_p6 = scmp.lt.s32.totalorder %s77_s29, %s77_s29 }
  0x2f   :  { %p611_p5 = scmp.ne.s32.totalorder %s77_s29, %s610_s3  ;;  %p616_p7 = scmp.lt.s32.totalorder %s610_s3, %s610_s3 }
  0x31   :  { %p617_p8 = por %p616_p7, %p615_p6 }
  0x33   :  { %p618_p9 = pnand %p617_p8, %p611_p5 }
  0x35   :  { %621 = shalt.err (!%p618_p9)
}
  0x36   :  { %82 = dma.hbm_to_vmem [thread:$0]  %s949_s5, 1024, %s77_s29, [#allocation14], %s744_s1, %s744_s1, %s745_s24  }
  0x37   :  { %s622_s19 = scalar_lea.hbm %s944_s0, 256 }
  0x38   :  { %p623_p10 = scmp.ne.s32.totalorder %s944_s0, %s622_s19  ;;  %p626_p11 = scmp.lt.u32.totalorder %s622_s19, %s944_s0 }
  0x3a   :  { %p628_p12 = pnand %p626_p11, %p623_p10 }
  0x3c   :  { %631 = shalt.err (!%p628_p12)
}
  0x3d   :  { %s632_s25 = scalar_lea.vmem %s827_s8, 256  ;;  %p637_p0 = scmp.lt.s32.totalorder %s827_s8, %s827_s8 }
  0x3e   :  { %p633_p13 = scmp.ne.s32.totalorder %s827_s8, %s632_s25  ;;  %p638_p1 = scmp.lt.s32.totalorder %s632_s25, %s632_s25 }
  0x40   :  { %p639_p2 = por %p638_p1, %p637_p0 }
  0x42   :  { %p640_p3 = pnand %p639_p2, %p633_p13 }
  0x44   :  { %643 = shalt.err (!%p640_p3)
}
  0x45   :  { %s748_s5 = smov 128   ;;  %s749_s1 = smov 8  }
  0x46   :  { %28 = dma.hbm_to_vmem [thread:$0]  %s944_s0, 256, %s827_s8, [#allocation5], %s748_s5, %s748_s5, %s749_s1  }
  0x47   :  { %s750_s28 = smov [#allocation9]   ;;  %s751_s30 = smov [#allocation12]  }
  0x48   :  { %s45_s29 = sshll.u32 %s750_s28, 4  ;;  %s67_s9 = sshll.u32 %s751_s30, 4  ;;  %s46_s29 = int_to_ptr.vmem [resolvable:$true] %s45_s29  ;;  %s68_s9 = int_to_ptr.vmem [resolvable:$true] %s67_s9 }
  0x49   :  { %s644_s12 = scalar_lea.hbm %s946_s2, 16 }
  0x4a   :  { %p645_p4 = scmp.ne.s32.totalorder %s946_s2, %s644_s12  ;;  %p648_p5 = scmp.lt.u32.totalorder %s644_s12, %s946_s2 }
  0x4c   :  { %p650_p6 = pnand %p648_p5, %p645_p4 }
  0x4e   :  { %653 = shalt.err (!%p650_p6)
}
  0x4f   :  { %s654_s0 = scalar_lea.vmem %s46_s29, 16  ;;  %s658_s8 = scalar_lea.vmem %s46_s29, 32 }
  0x50   :  { %p655_p7 = scmp.ne.s32.totalorder %s46_s29, %s654_s0  ;;  %p659_p8 = scmp.lt.s32.totalorder %s46_s29, %s46_s29 }
  0x51   :  { %p660_p9 = scmp.lt.s32.totalorder %s658_s8, %s654_s0 }
  0x53   :  { %p661_p10 = por %p660_p9, %p659_p8 }
  0x55   :  { %p662_p11 = pnand %p661_p10, %p655_p7 }
  0x57   :  { %665 = shalt.err (!%p662_p11)
}
  0x58   :  { %48 = dma.hbm_to_vmem [thread:$0]  %s946_s2, 16, %s46_s29, [#allocation8]  }
  0x59   :  { %s666_s19 = scalar_lea.hbm %s948_s4, 16 }
  0x5a   :  { %p667_p12 = scmp.ne.s32.totalorder %s948_s4, %s666_s19  ;;  %p670_p13 = scmp.lt.u32.totalorder %s666_s19, %s948_s4 }
  0x5c   :  { %p672_p0 = pnand %p670_p13, %p667_p12 }
  0x5e   :  { %675 = shalt.err (!%p672_p0)
}
  0x5f   :  { %s676_s25 = scalar_lea.vmem %s68_s9, 16  ;;  %s680_s24 = scalar_lea.vmem %s68_s9, 32 }
  0x60   :  { %p677_p1 = scmp.ne.s32.totalorder %s68_s9, %s676_s25  ;;  %p681_p2 = scmp.lt.s32.totalorder %s68_s9, %s68_s9 }
  0x61   :  { %p682_p3 = scmp.lt.s32.totalorder %s680_s24, %s676_s25 }
  0x63   :  { %p683_p4 = por %p682_p3, %p681_p2 }
  0x65   :  { %p684_p5 = pnand %p683_p4, %p677_p1 }
  0x67   :  { %687 = shalt.err (!%p684_p5)
}
  0x68   :  { %70 = dma.hbm_to_vmem [thread:$0]  %s948_s4, 16, %s68_s9, [#allocation11]  }
  0x69   :  { %s752_s28 = smov [#allocation15]   ;;  %s688_s11 = scalar_lea.hbm %s950_s6, 16 }
  0x6a   :  { %s89_s29 = sshll.u32 %s752_s28, 4  ;;  %p689_p6 = scmp.ne.s32.totalorder %s950_s6, %s688_s11  ;;  %s90_s29 = int_to_ptr.vmem [resolvable:$true] %s89_s29 }
  0x6b   :  { %p692_p7 = scmp.lt.u32.totalorder %s688_s11, %s950_s6 }
  0x6d   :  { %p694_p8 = pnand %p692_p7, %p689_p6 }
  0x6f   :  { %697 = shalt.err (!%p694_p8)
}
  0x70   :  { %s698_s3 = scalar_lea.vmem %s90_s29, 16  ;;  %s702_s4 = scalar_lea.vmem %s90_s29, 32 }
  0x71   :  { %p699_p9 = scmp.ne.s32.totalorder %s90_s29, %s698_s3  ;;  %p703_p10 = scmp.lt.s32.totalorder %s90_s29, %s90_s29 }
  0x72   :  { %p704_p11 = scmp.lt.s32.totalorder %s702_s4, %s698_s3 }
  0x74   :  { %p705_p12 = por %p704_p11, %p703_p10 }
  0x76   :  { %p706_p13 = pnand %p705_p12, %p699_p9 }
  0x78   :  { %709 = shalt.err (!%p706_p13)
}
  0x79   :  { %92 = dma.hbm_to_vmem [thread:$0]  %s950_s6, 16, %s90_s29, [#allocation14]  }
  0x7a   :  { %732 = dma.done.wait [#allocation5], 256  }
  0x7b   :  { %733 = vsyncadd [#allocation5], 4294967040 }
  0x7c   :  { %734 = dma.done.wait [#allocation8], 32  }
  0x7d   :  { %735 = vsyncadd [#allocation8], 4294967264 }
  0x7e   :  { %736 = dma.done.wait [#allocation11], 1040  }
  0x7f   :  { %737 = vsyncadd [#allocation11], 4294966256 }
  0x80   :  { %738 = dma.done.wait [#allocation14], 1040  }
  0x81   :  { %739 = vsyncadd [#allocation14], 4294966256  ;;  %v753_v0 = vmov 0.0   ;;  %v899_v1 = vld [vmem:[#allocation4] sm:$0xff]  ;;  %v901_v2 = vld [vmem:[#allocation4 + $0x8] sm:$0xff]  ;;  %vm754_vm0 = vmmov 0  }
  0x82   :  { %478 = vmatprep.subr.bf16.mxu0 %v753_v0  ;;  %498 = vmatprep.subr.bf16.mxu1 %v753_v0  ;;  %v125_v3 = vmul.f32 %v899_v1, %v899_v1  ;;  %v126_v4 = vmul.f32 %v901_v2, %v901_v2  ;;  %v532_v5 = vld [vmem:[#allocation10] sm:$0xff]   ;;  %v533_v6 = vld [vmem:[#allocation10 + $0x8] sm:$0xff]   ;;  %v534_v7 = vld [vmem:[#allocation10 + $0x10] sm:$0xff]   ;;  %s755_s6 = smov [#allocation16]  }
  0x83   :  { %121 = vadd.xlane.f32.xlu0 %v899_v1  ;;  %479 = vmatpush3.bf16.msra.mxu0 %v532_v5  ;;  %v535_v8 = vld [vmem:[#allocation10 + $0x18] sm:$0xff]   ;;  %v536_v9 = vld [vmem:[#allocation10 + $0x20] sm:$0xff]   ;;  %v537_v10 = vld [vmem:[#allocation10 + $0x28] sm:$0xff]   ;;  %s425_s8 = sshll.u32 %s755_s6, 4  ;;  %s426_s8 = int_to_ptr.vmem [resolvable:$true] %s425_s8 }
  0x84   :  { %127 = vadd.xlane.f32.xlu1 %v125_v3  ;;  %480 = vmatprep.subr.bf16.mxu0 %v753_v0  ;;  %v538_v11 = vld [vmem:[#allocation10 + $0x30] sm:$0xff]   ;;  %v539_v12 = vld [vmem:[#allocation10 + $0x38] sm:$0xff]   ;;  %v540_v13 = vld [vmem:[#allocation13] sm:$0xff]   ;;  %s710_s27 = scalar_lea.vmem %s426_s8, 256  ;;  %p715_p1 = scmp.lt.s32.totalorder %s426_s8, %s426_s8 }
  0x85   :  { %494 = vmatprep.mubr.msk.bf16.mxu0 %vm754_vm0, %v753_v0  ;;  %514 = vmatprep.mubr.msk.bf16.mxu1 %vm754_vm0, %v753_v0  ;;  %v541_v14 = vld [vmem:[#allocation13 + $0x8] sm:$0xff]   ;;  %v440_v32 = vld [vmem:[#allocation7] ss:$0 sm:$0xff]  ;;  %v441_v37 = vld [vmem:[#allocation9] ss:$0 sm:$0xff]  ;;  %p711_p0 = scmp.ne.s32.totalorder %s426_s8, %s710_s27  ;;  %p716_p2 = scmp.lt.s32.totalorder %s710_s27, %s710_s27 }
  0x86   :  { %499 = vmatpush3.bf16.msra.mxu1 %v540_v13  ;;  %v542_v42 = vld [vmem:[#allocation13 + $0x10] sm:$0xff]   ;;  %v543_v43 = vld [vmem:[#allocation13 + $0x18] sm:$0xff]   ;;  %v544_v44 = vld [vmem:[#allocation13 + $0x20] sm:$0xff]  }
  0x87   :  { %123 = vadd.xlane.f32.xlu0 %v901_v2  ;;  %481 = vmatpush3.bf16.msra.mxu0 %v533_v6  ;;  %v545_v45 = vld [vmem:[#allocation13 + $0x28] sm:$0xff]   ;;  %v546_v46 = vld [vmem:[#allocation13 + $0x30] sm:$0xff]   ;;  %v547_v47 = vld [vmem:[#allocation13 + $0x38] sm:$0xff]   ;;  %p717_p3 = por %p716_p2, %p715_p1 }
  0x88   :  { %129 = vadd.xlane.f32.xlu1 %v126_v4  ;;  %482 = vmatprep.subr.bf16.mxu0 %v753_v0  ;;  %v443_v48 = vld [vmem:[#allocation12] ss:$0 sm:$0xff]  ;;  %v442_v4 = vld [vmem:[#allocation15] ss:$0 sm:$0xff] }
  0x89   :  { %500 = vmatprep.subr.bf16.mxu1 %v753_v0  ;;  %v174_v5 = vadd.f32 %v442_v4, %v899_v1  ;;  %v175_v6 = vadd.f32 %v442_v4, %v901_v2  ;;  %p718_p4 = pnand %p717_p3, %p711_p0 }
  0x8a   :  { %501 = vmatpush3.bf16.msra.mxu1 %v541_v14 }
  0x8b   :  { %483 = vmatpush3.bf16.msra.mxu0 %v534_v7  ;;  %502 = vmatprep.subr.bf16.mxu1 %v753_v0 }
  0x8c   :  { %484 = vmatprep.subr.bf16.mxu0 %v753_v0 }
  0x8e   :  { %503 = vmatpush3.bf16.msra.mxu1 %v542_v42 }
  0x8f   :  { %485 = vmatpush3.bf16.msra.mxu0 %v535_v8  ;;  %504 = vmatprep.subr.bf16.mxu1 %v753_v0 }
  0x90   :  { %486 = vmatprep.subr.bf16.mxu0 %v753_v0 }
  0x92   :  { %505 = vmatpush3.bf16.msra.mxu1 %v543_v43 }
  0x93   :  { %487 = vmatpush3.bf16.msra.mxu0 %v536_v9  ;;  %506 = vmatprep.subr.bf16.mxu1 %v753_v0 }
  0x94   :  { %488 = vmatprep.subr.bf16.mxu0 %v753_v0 }
  0x96   :  { %507 = vmatpush3.bf16.msra.mxu1 %v544_v44 }
  0x97   :  { %489 = vmatpush3.bf16.msra.mxu0 %v537_v10  ;;  %508 = vmatprep.subr.bf16.mxu1 %v753_v0 }
  0x98   :  { %490 = vmatprep.subr.bf16.mxu0 %v753_v0 }
  0x9a   :  { %509 = vmatpush3.bf16.msra.mxu1 %v545_v45 }
  0x9b   :  { %491 = vmatpush3.bf16.msra.mxu0 %v538_v11  ;;  %510 = vmatprep.subr.bf16.mxu1 %v753_v0 }
  0x9c   :  { %492 = vmatprep.subr.bf16.mxu0 %v753_v0 }
  0x9e   :  { %511 = vmatpush3.bf16.msra.mxu1 %v546_v46 }
  0x9f   :  { %493 = vmatpush3.bf16.msra.mxu0 %v539_v12  ;;  %512 = vmatprep.subr.bf16.mxu1 %v753_v0 }
  0xa2   :  { %513 = vmatpush3.bf16.msra.mxu1 %v547_v47 }
 0x110   :  { %v122_v15 = vpop.xlane.xlu0 %121 }
 0x111   :  { %v131_v16 = vmul.f32 0.03125, %v122_v15  ;;  %v128_v17 = vpop.xlane.xlu1 %127 }
 0x112   :  { %v133_v19 = vmul.f32 0.03125, %v128_v17 }
 0x113   :  { %v135_v18 = vmul.f32 %v131_v16, %v131_v16  ;;  %v139_v29 = vsub.f32 %v899_v1, %v131_v16 }
 0x114   :  { %v124_v20 = vpop.xlane.xlu0 %123 }
 0x115   :  { %v137_v21 = vsub.f32 %v133_v19, %v135_v18  ;;  %v132_v22 = vmul.f32 0.03125, %v124_v20  ;;  %v130_v23 = vpop.xlane.xlu1 %129 }
 0x116   :  { %v134_v26 = vmul.f32 0.03125, %v130_v23 }
 0x117   :  { %v141_v24 = vadd.f32 1e-05, %v137_v21  ;;  %v136_v25 = vmul.f32 %v132_v22, %v132_v22  ;;  %v140_v33 = vsub.f32 %v901_v2, %v132_v22 }
 0x119   :  { %548 = vrsqrt.f32 %v141_v24  ;;  %v138_v27 = vsub.f32 %v134_v26, %v136_v25 }
 0x11b   :  { %v142_v28 = vadd.f32 1e-05, %v138_v27 }
 0x11d   :  { %550 = vrsqrt.f32 %v142_v28 }
 0x123   :  { %v549_v30 = vpop.eup %548 }
 0x124   :  { %v145_v31 = vmul.f32 %v549_v30, %v139_v29 }
 0x126   :  { %v154_v36 = vmul.f32 %v440_v32, %v145_v31 }
 0x127   :  { %v551_v34 = vpop.eup %550 }
 0x128   :  { %v146_v35 = vmul.f32 %v551_v34, %v140_v33  ;;  %v163_v39 = vadd.f32 %v441_v37, %v154_v36 }
 0x12a   :  { %v155_v38 = vmul.f32 %v440_v32, %v146_v35 }
 0x12c   :  { %v164_v40 = vadd.f32 %v441_v37, %v155_v38 }
 0x12e   :  { %v165_v41 = vpack.c.bf16 %v164_v40, %v163_v39 }
 0x130   :  { %495 = vmatmul.mubr.bf16.vlgmr.msra.gmra.mrb[0].mxu0 %v165_v41 }
 0x203   :  { %v284_v49 = vpop.f32.mrb[0].mxu0 }
 0x204   :  { %v285_v50 = vadd.f32 %v443_v48, %v284_v49  ;;  %v496_v51 = vpop.f32.mrb[1].mxu0 }
 0x205   :  { %v287_v52 = vpop.f32.mrb[2].mxu0 }
 0x206   :  { %v293_v53 = vmul.f32 0.70710677, %v285_v50  ;;  %v288_v54 = vadd.f32 %v443_v48, %v287_v52  ;;  %v497_v55 = vpop.f32.mrb[3].mxu0  ;;  %v291_v60 = vmul.f32 0.5, %v285_v50 }
 0x208   :  { %552 = verf.f32 %v293_v53  ;;  %v294_v56 = vmul.f32 0.70710677, %v288_v54  ;;  %v292_v61 = vmul.f32 0.5, %v288_v54 }
 0x20a   :  { %554 = verf.f32 %v294_v56 }
 0x212   :  { %v553_v57 = vpop.eup %552 }
 0x213   :  { %v297_v58 = vadd.f32 1.0, %v553_v57 }
 0x214   :  { %v555_v59 = vpop.eup %554 }
 0x215   :  { %v298_v62 = vadd.f32 1.0, %v555_v59  ;;  %v299_v63 = vmul.f32 %v297_v58, %v291_v60 }
 0x217   :  { %v300_v0 = vmul.f32 %v298_v62, %v292_v61 }
 0x219   :  { %v303_v3 = vpack.c.bf16 %v300_v0, %v299_v63 }
 0x21b   :  { %515 = vmatmul.mubr.bf16.vlgmr.msra.gmra.mrb[0].mxu1 %v303_v3 }
 0x2ee   :  { %v402_v7 = vpop.f32.mrb[0].mxu1 }
 0x2ef   :  { %v409_v8 = vadd.f32 %v402_v7, %v174_v5  ;;  %v516_v9 = vpop.f32.mrb[1].mxu1 }
 0x2f0   :  { %v405_v10 = vpop.f32.mrb[2].mxu1 }
 0x2f1   :  { %418 = vst [vmem:[#allocation16] sm:$0xff] %v409_v8  ;;  %v410_v11 = vadd.f32 %v405_v10, %v175_v6  ;;  %v517_v12 = vpop.f32.mrb[3].mxu1 }
 0x2f3   :  { %419 = vst [vmem:[#allocation16 + $0x8] sm:$0xff] %v410_v11 }
 0x2f4   :  { %721 = shalt.err (!%p718_p4)
}
 0x2f5   :  { %s722_s18 = scalar_lea.hbm %s951_s7, 256 }
 0x2f6   :  { %p723_p5 = scmp.ne.s32.totalorder %s951_s7, %s722_s18  ;;  %p726_p6 = scmp.lt.u32.totalorder %s722_s18, %s951_s7 }
 0x2f8   :  { %p728_p7 = pnand %p726_p6, %p723_p5 }
 0x2fa   :  { %731 = shalt.err (!%p728_p7)
}
 0x2fb   :  { %431 = dma.vmem_to_hbm [thread:$0]  %s426_s8, 256, %s951_s7, [#allocation6], %s748_s5, %s748_s5, %s749_s1  }
 0x2fc   :  { %740 = dma.done.wait [#allocation6], 256  }
 0x2fd   :  { %741 = vsyncadd [#allocation6], 4294967040 }
 0x2fe   :  { %435 = vsyncpa [#allocation5], 1 }
 0x2ff   :  { %436 = vsyncpa [#allocation8], 1 }
 0x300   :  { %437 = vsyncpa [#allocation11], 1 }
 0x301   :  { %438 = vsyncpa [#allocation14], 1 }
 0x302   :  { %439 = vsyncpa [#allocation6], 1 }

</bundles_post_ra>
